<compile_context>
chip_gen: v5e
topology: v5e:2x2
jax: 0.10.0
libtpu: 0.0.40
codegen_flags: <defaults>
</compile_context>

<pallas_src>
import math
import jax
import jax.numpy as jnp
from jax.experimental import pallas as pl
from jax.experimental.pallas import tpu as pltpu


# ------------------------------------------------------------------ kernel --
def char_gru_kernel(gi_ref, len_ref, wmask_ref, whh_ref, ghb_ref, out_ref):
    """One grid step == one block of TB independent char sequences.

    gi_ref    : (S, TB, 3H)  precomputed x@Wih + (b_ih + [b_hh_r, b_hh_z, 0])
    len_ref   : (TB, 1)      int32 sequence lengths (prefix-mask sums)
    wmask_ref : (TB, 1)      float word mask (applied to the final state)
    whh_ref   : (H, 3H)      fused hidden->hidden weights, gates r|z|n on lanes
    ghb_ref   : (1, 3H)      hidden bias: zeros for r,z slots, b_hh_n for n slot
    out_ref   : (TB, H)      word_mask * h_{length-1}
    """
    S = gi_ref.shape[0]
    TB = out_ref.shape[0]
    H = out_ref.shape[1]

    # Hoisted loop invariants.
    whh = whh_ref[...]          # (H, 3H)
    ghb = ghb_ref[...]          # (1, 3H)
    lengths = len_ref[...]      # (TB, 1) int32

    def step(t, h):
        gi = gi_ref[t]                                           # (TB, 3H)
        gh = jnp.dot(h, whh, preferred_element_type=jnp.float32) + ghb
        r = jax.nn.sigmoid(gi[:, :H] + gh[:, :H])
        z = jax.nn.sigmoid(gi[:, H:2 * H] + gh[:, H:2 * H])
        n = jnp.tanh(gi[:, 2 * H:] + r * gh[:, 2 * H:])
        h_new = (1.0 - z) * n + z * h
        m = (lengths > t).astype(jnp.float32)                    # (TB, 1)
        return m * h_new + (1.0 - m) * h                         # freeze past len

    h0 = jnp.zeros((TB, H), jnp.float32)
    h_last = jax.lax.fori_loop(0, S, step, h0, unroll=True)

    out_ref[...] = h_last * wmask_ref[...]


# ----------------------------------------------------------------- wrapper --
def _round_up(n, m):
    return ((n + m - 1) // m) * m


def char_encoder_forward(x, char_mask, word_mask, w_ih, w_hh, b_ih, b_hh):
    """x: (B, T, W, I); char_mask: (B, T, W); word_mask: (B, T).
    Weights in PyTorch GRU layout: w_ih (3H, I), w_hh (3H, H), biases (3H,)
    with gate order (r, z, n).  Returns (T, B, H)."""
    batch, seq_len, word_len, emb = x.shape
    H = w_hh.shape[1]
    S = word_len
    Bf = batch * seq_len

    # ---- weight repacking: fuse gates on the lane axis, fold r/z biases ----
    wih_f = jnp.transpose(w_ih).astype(jnp.float32)          # (I, 3H)
    whh_f = jnp.transpose(w_hh).astype(jnp.float32)          # (H, 3H)
    gib = (b_ih + jnp.concatenate(
        [b_hh[:2 * H], jnp.zeros((H,), b_hh.dtype)])).astype(jnp.float32)   # (3H,)
    ghb = jnp.concatenate(
        [jnp.zeros((2 * H,), b_hh.dtype), b_hh[2 * H:]]).astype(jnp.float32)[None, :]

    # ---- hoisted input->hidden matmul over ALL timesteps (full MXU shape) ---
    v = jnp.swapaxes(x.reshape(Bf, S, emb).astype(jnp.float32), 0, 1)  # (S, Bf, I)
    gi = jnp.matmul(v, wih_f) + gib                                    # (S, Bf, 3H)

    lengths = char_mask.reshape(Bf, S).astype(jnp.int32).sum(axis=1)[:, None]  # (Bf,1)
    wmask = word_mask.reshape(Bf).astype(jnp.float32)[:, None]                 # (Bf,1)

    # ---- batch-block tiling: >=2 parallel blocks when possible (v7x 2 TCs) --
    b_pad8 = _round_up(Bf, 8)
    if b_pad8 >= 16:
        TB = min(128, max(8, ((b_pad8 // 2) // 8) * 8))
    else:
        TB = b_pad8
    B_pad = _round_up(Bf, TB)
    pad = B_pad - Bf
    if pad:
        gi = jnp.pad(gi, ((0, 0), (0, pad), (0, 0)))
        lengths = jnp.pad(lengths, ((0, pad), (0, 0)))
        wmask = jnp.pad(wmask, ((0, pad), (0, 0)))

    grid = (B_pad // TB,)
    grid_spec = pltpu.PrefetchScalarGridSpec(
        num_scalar_prefetch=0,
        grid=grid,
        in_specs=[
            pl.BlockSpec((S, TB, 3 * H), lambda b: (0, b, 0)),   # gi (time-major)
            pl.BlockSpec((TB, 1), lambda b: (b, 0)),             # lengths
            pl.BlockSpec((TB, 1), lambda b: (b, 0)),             # word mask
            pl.BlockSpec((H, 3 * H), lambda b: (0, 0)),          # Whh fused
            pl.BlockSpec((1, 3 * H), lambda b: (0, 0)),          # hh bias (n slot)
        ],
        out_specs=pl.BlockSpec((TB, H), lambda b: (b, 0)),
    )

    out = pl.pallas_call(
        char_gru_kernel,
        grid_spec=grid_spec,
        out_shape=jax.ShapeDtypeStruct((B_pad, H), jnp.float32),
        compiler_params=pltpu.CompilerParams(
            dimension_semantics=("parallel",)),
    )(gi, lengths, wmask, whh_f, ghb)

    enc = out[:Bf].reshape(batch, seq_len, H)        # (B, T, H) = o_last * word_mask
    return jnp.swapaxes(enc, 0, 1)                   # (T, B, H)


# ------------------------------------------------------------ pure-JAX ref --
def char_encoder_reference(x, char_mask, word_mask, w_ih, w_hh, b_ih, b_hh):
    batch, seq_len, S, emb = x.shape
    H = w_hh.shape[1]
    Bf = batch * seq_len
    v = jnp.swapaxes(x.reshape(Bf, S, emb).astype(jnp.float32), 0, 1)         # (S,Bf,I)
    cm = jnp.transpose(char_mask.reshape(Bf, S).astype(jnp.float32))[:, :, None]

    def step(h, inp):
        xt, mt = inp
        gi = xt @ w_ih.T + b_ih
        gh = h @ w_hh.T + b_hh
        r = jax.nn.sigmoid(gi[:, :H] + gh[:, :H])
        z = jax.nn.sigmoid(gi[:, H:2 * H] + gh[:, H:2 * H])
        n = jnp.tanh(gi[:, 2 * H:] + r * gh[:, 2 * H:])
        h_new = (1.0 - z) * n + z * h
        return mt * h_new + (1.0 - mt) * h, None

    h0 = jnp.zeros((Bf, H), jnp.float32)
    h_last, _ = jax.lax.scan(step, h0, (v, cm))
    enc = h_last.reshape(batch, seq_len, H) * word_mask.astype(jnp.float32)[:, :, None]
    return jnp.swapaxes(enc, 0, 1)


# -------------------------------------------------------------------- main --
if __name__ == "__main__":
    batch, seq_len, word_len = 2, 8, 8
    input_size, hidden_size = 16, 32
    H = hidden_size

    key = jax.random.PRNGKey(0)
    k_x, k_ih, k_hh, k_bih, k_bhh, k_cl, k_wl = jax.random.split(key, 7)

    # Keras-style init mirroring reset_parameters (xavier_uniform ih,
    # orthogonal hh).  The module zeroes biases; small random biases are used
    # here instead so the in-kernel bias-folding path is exercised numerically.
    bound = math.sqrt(6.0 / (input_size + 3 * hidden_size))
    w_ih = jax.random.uniform(k_ih, (3 * H, input_size), jnp.float32, -bound, bound)
    w_hh = jax.nn.initializers.orthogonal()(k_hh, (3 * H, H), jnp.float32)
    b_ih = 0.1 * jax.random.normal(k_bih, (3 * H,), jnp.float32)
    b_hh = 0.1 * jax.random.normal(k_bhh, (3 * H,), jnp.float32)

    x = jax.random.normal(k_x, (batch, seq_len, word_len, input_size), jnp.float32)

    char_lens = jax.random.randint(k_cl, (batch, seq_len), 1, word_len + 1)
    char_mask = (jnp.arange(word_len)[None, None, :]
                 < char_lens[:, :, None]).astype(jnp.int32)
    word_lens = jax.random.randint(k_wl, (batch,), 1, seq_len + 1)
    word_mask = (jnp.arange(seq_len)[None, :] < word_lens[:, None]).astype(jnp.int32)

    out = char_encoder_forward(x, char_mask, word_mask, w_ih, w_hh, b_ih, b_hh)
    out = jax.block_until_ready(out)

    ref = char_encoder_reference(x, char_mask, word_mask, w_ih, w_hh, b_ih, b_hh)
    assert out.shape == (seq_len, batch, hidden_size)
    assert jnp.allclose(out, ref, atol=1e-5, rtol=1e-5), \
        float(jnp.max(jnp.abs(out - ref)))

    print("KERNEL_OK")
</pallas_src>

<mosaic_0001>
module attributes {stable_mosaic.version = 11 : i64} {
  func.func @char_gru_kernel(%arg0: i32, %arg1: memref<8x8x96xf32, #tpu.memory_space<vmem>>, %arg2: memref<8x1xi32, #tpu.memory_space<vmem>>, %arg3: memref<8x1xf32, #tpu.memory_space<vmem>>, %arg4: memref<32x96xf32, #tpu.memory_space<vmem>>, %arg5: memref<1x96xf32, #tpu.memory_space<vmem>>, %arg6: memref<8x32xf32, #tpu.memory_space<vmem>>) attributes {dimension_semantics = [#tpu.dimension_semantics<parallel>], iteration_bounds = array<i64: 2>, scalar_prefetch = 0 : i64, scratch_operands = 0 : i64, tpu.core_type = #tpu.core_type<tc>, window_params = [{transform_indices = @transform_0, window_bounds = array<i64: 8, 8, 96>}, {transform_indices = @transform_1, window_bounds = array<i64: 8, 1>}, {transform_indices = @transform_2, window_bounds = array<i64: 8, 1>}, {pipeline_mode = #tpu.pipeline_mode<synchronous>, transform_indices = @transform_3, window_bounds = array<i64: 32, 96>}, {pipeline_mode = #tpu.pipeline_mode<synchronous>, transform_indices = @transform_4, window_bounds = array<i64: 1, 96>}, {transform_indices = @transform_5, window_bounds = array<i64: 8, 32>}]} {
    %c0 = arith.constant 0 : index
    %c0_0 = arith.constant 0 : index
    %0 = vector.load %arg4[%c0, %c0_0] : memref<32x96xf32, #tpu.memory_space<vmem>>, vector<32x96xf32>
    %c0_1 = arith.constant 0 : index
    %c0_2 = arith.constant 0 : index
    %1 = vector.load %arg5[%c0_1, %c0_2] : memref<1x96xf32, #tpu.memory_space<vmem>>, vector<1x96xf32>
    %c0_3 = arith.constant 0 : index
    %c0_4 = arith.constant 0 : index
    %2 = vector.load %arg2[%c0_3, %c0_4] : memref<8x1xi32, #tpu.memory_space<vmem>>, vector<8x1xi32>
    %cst = arith.constant 0.000000e+00 : f32
    %3 = vector.broadcast %cst : f32 to vector<8x32xf32>
    %c0_i32 = arith.constant 0 : i32
    %4 = arith.index_cast %c0_i32 : i32 to index
    %c0_5 = arith.constant 0 : index
    %c0_6 = arith.constant 0 : index
    %5 = vector.load %arg1[%4, %c0_5, %c0_6] : memref<8x8x96xf32, #tpu.memory_space<vmem>>, vector<1x8x96xf32>
    %6 = vector.shape_cast %5 : vector<1x8x96xf32> to vector<8x96xf32>
    %cst_7 = arith.constant dense<0.000000e+00> : vector<8x96xf32>
    %7 = tpu.matmul %3, %0, %cst_7 {dimension_numbers = #tpu.dot_dimension_numbers<[1], [0], [0], [1], [0, 0, 1, 1], [], []>} : vector<8x32xf32>, vector<32x96xf32>, vector<8x96xf32> -> vector<8x96xf32>
    %8 = vector.broadcast %1 : vector<1x96xf32> to vector<8x96xf32>
    %9 = arith.addf %7, %8 : vector<8x96xf32>
    %10 = vector.extract_strided_slice %6 {offsets = [0, 0], sizes = [8, 32], strides = [1, 1]} : vector<8x96xf32> to vector<8x32xf32>
    %11 = vector.extract_strided_slice %9 {offsets = [0, 0], sizes = [8, 32], strides = [1, 1]} : vector<8x96xf32> to vector<8x32xf32>
    %12 = arith.addf %10, %11 : vector<8x32xf32>
    %13 = arith.negf %12 : vector<8x32xf32>
    %14 = math.exp %13 : vector<8x32xf32>
    %cst_8 = arith.constant 1.000000e+00 : f32
    %15 = vector.broadcast %cst_8 : f32 to vector<8x32xf32>
    %16 = arith.addf %15, %14 : vector<8x32xf32>
    %17 = arith.divf %15, %16 : vector<8x32xf32>
    %18 = vector.extract_strided_slice %6 {offsets = [0, 32], sizes = [8, 32], strides = [1, 1]} : vector<8x96xf32> to vector<8x32xf32>
    %19 = vector.extract_strided_slice %9 {offsets = [0, 32], sizes = [8, 32], strides = [1, 1]} : vector<8x96xf32> to vector<8x32xf32>
    %20 = arith.addf %18, %19 : vector<8x32xf32>
    %21 = arith.negf %20 : vector<8x32xf32>
    %22 = math.exp %21 : vector<8x32xf32>
    %cst_9 = arith.constant 1.000000e+00 : f32
    %23 = vector.broadcast %cst_9 : f32 to vector<8x32xf32>
    %24 = arith.addf %23, %22 : vector<8x32xf32>
    %25 = arith.divf %23, %24 : vector<8x32xf32>
    %26 = vector.extract_strided_slice %6 {offsets = [0, 64], sizes = [8, 32], strides = [1, 1]} : vector<8x96xf32> to vector<8x32xf32>
    %27 = vector.extract_strided_slice %9 {offsets = [0, 64], sizes = [8, 32], strides = [1, 1]} : vector<8x96xf32> to vector<8x32xf32>
    %28 = arith.mulf %17, %27 : vector<8x32xf32>
    %29 = arith.addf %26, %28 : vector<8x32xf32>
    %30 = math.tanh %29 : vector<8x32xf32>
    %cst_10 = arith.constant 1.000000e+00 : f32
    %31 = vector.broadcast %cst_10 : f32 to vector<8x32xf32>
    %32 = arith.subf %31, %25 : vector<8x32xf32>
    %33 = arith.mulf %32, %30 : vector<8x32xf32>
    %34 = arith.mulf %25, %3 : vector<8x32xf32>
    %35 = arith.addf %33, %34 : vector<8x32xf32>
    %36 = vector.broadcast %c0_i32 : i32 to vector<8x1xi32>
    %37 = arith.cmpi sgt, %2, %36 : vector<8x1xi32>
    %38 = arith.extui %37 : vector<8x1xi1> to vector<8x1xi32>
    %39 = arith.sitofp %38 : vector<8x1xi32> to vector<8x1xf32>
    %40 = vector.broadcast %39 : vector<8x1xf32> to vector<8x32xf32>
    %41 = arith.mulf %40, %35 : vector<8x32xf32>
    %cst_11 = arith.constant 1.000000e+00 : f32
    %42 = vector.broadcast %cst_11 : f32 to vector<8x1xf32>
    %43 = arith.subf %42, %39 : vector<8x1xf32>
    %44 = vector.broadcast %43 : vector<8x1xf32> to vector<8x32xf32>
    %45 = arith.mulf %44, %3 : vector<8x32xf32>
    %46 = arith.addf %41, %45 : vector<8x32xf32>
    %c1_i32 = arith.constant 1 : i32
    %47 = arith.index_cast %c1_i32 : i32 to index
    %c0_12 = arith.constant 0 : index
    %c0_13 = arith.constant 0 : index
    %48 = vector.load %arg1[%47, %c0_12, %c0_13] : memref<8x8x96xf32, #tpu.memory_space<vmem>>, vector<1x8x96xf32>
    %49 = vector.shape_cast %48 : vector<1x8x96xf32> to vector<8x96xf32>
    %cst_14 = arith.constant dense<0.000000e+00> : vector<8x96xf32>
    %50 = tpu.matmul %46, %0, %cst_14 {dimension_numbers = #tpu.dot_dimension_numbers<[1], [0], [0], [1], [0, 0, 1, 1], [], []>} : vector<8x32xf32>, vector<32x96xf32>, vector<8x96xf32> -> vector<8x96xf32>
    %51 = vector.broadcast %1 : vector<1x96xf32> to vector<8x96xf32>
    %52 = arith.addf %50, %51 : vector<8x96xf32>
    %53 = vector.extract_strided_slice %49 {offsets = [0, 0], sizes = [8, 32], strides = [1, 1]} : vector<8x96xf32> to vector<8x32xf32>
    %54 = vector.extract_strided_slice %52 {offsets = [0, 0], sizes = [8, 32], strides = [1, 1]} : vector<8x96xf32> to vector<8x32xf32>
    %55 = arith.addf %53, %54 : vector<8x32xf32>
    %56 = arith.negf %55 : vector<8x32xf32>
    %57 = math.exp %56 : vector<8x32xf32>
    %cst_15 = arith.constant 1.000000e+00 : f32
    %58 = vector.broadcast %cst_15 : f32 to vector<8x32xf32>
    %59 = arith.addf %58, %57 : vector<8x32xf32>
    %60 = arith.divf %58, %59 : vector<8x32xf32>
    %61 = vector.extract_strided_slice %49 {offsets = [0, 32], sizes = [8, 32], strides = [1, 1]} : vector<8x96xf32> to vector<8x32xf32>
    %62 = vector.extract_strided_slice %52 {offsets = [0, 32], sizes = [8, 32], strides = [1, 1]} : vector<8x96xf32> to vector<8x32xf32>
    %63 = arith.addf %61, %62 : vector<8x32xf32>
    %64 = arith.negf %63 : vector<8x32xf32>
    %65 = math.exp %64 : vector<8x32xf32>
    %cst_16 = arith.constant 1.000000e+00 : f32
    %66 = vector.broadcast %cst_16 : f32 to vector<8x32xf32>
    %67 = arith.addf %66, %65 : vector<8x32xf32>
    %68 = arith.divf %66, %67 : vector<8x32xf32>
    %69 = vector.extract_strided_slice %49 {offsets = [0, 64], sizes = [8, 32], strides = [1, 1]} : vector<8x96xf32> to vector<8x32xf32>
    %70 = vector.extract_strided_slice %52 {offsets = [0, 64], sizes = [8, 32], strides = [1, 1]} : vector<8x96xf32> to vector<8x32xf32>
    %71 = arith.mulf %60, %70 : vector<8x32xf32>
    %72 = arith.addf %69, %71 : vector<8x32xf32>
    %73 = math.tanh %72 : vector<8x32xf32>
    %cst_17 = arith.constant 1.000000e+00 : f32
    %74 = vector.broadcast %cst_17 : f32 to vector<8x32xf32>
    %75 = arith.subf %74, %68 : vector<8x32xf32>
    %76 = arith.mulf %75, %73 : vector<8x32xf32>
    %77 = arith.mulf %68, %46 : vector<8x32xf32>
    %78 = arith.addf %76, %77 : vector<8x32xf32>
    %79 = vector.broadcast %c1_i32 : i32 to vector<8x1xi32>
    %80 = arith.cmpi sgt, %2, %79 : vector<8x1xi32>
    %81 = arith.extui %80 : vector<8x1xi1> to vector<8x1xi32>
    %82 = arith.sitofp %81 : vector<8x1xi32> to vector<8x1xf32>
    %83 = vector.broadcast %82 : vector<8x1xf32> to vector<8x32xf32>
    %84 = arith.mulf %83, %78 : vector<8x32xf32>
    %cst_18 = arith.constant 1.000000e+00 : f32
    %85 = vector.broadcast %cst_18 : f32 to vector<8x1xf32>
    %86 = arith.subf %85, %82 : vector<8x1xf32>
    %87 = vector.broadcast %86 : vector<8x1xf32> to vector<8x32xf32>
    %88 = arith.mulf %87, %46 : vector<8x32xf32>
    %89 = arith.addf %84, %88 : vector<8x32xf32>
    %c2_i32 = arith.constant 2 : i32
    %90 = arith.index_cast %c2_i32 : i32 to index
    %c0_19 = arith.constant 0 : index
    %c0_20 = arith.constant 0 : index
    %91 = vector.load %arg1[%90, %c0_19, %c0_20] : memref<8x8x96xf32, #tpu.memory_space<vmem>>, vector<1x8x96xf32>
    %92 = vector.shape_cast %91 : vector<1x8x96xf32> to vector<8x96xf32>
    %cst_21 = arith.constant dense<0.000000e+00> : vector<8x96xf32>
    %93 = tpu.matmul %89, %0, %cst_21 {dimension_numbers = #tpu.dot_dimension_numbers<[1], [0], [0], [1], [0, 0, 1, 1], [], []>} : vector<8x32xf32>, vector<32x96xf32>, vector<8x96xf32> -> vector<8x96xf32>
    %94 = vector.broadcast %1 : vector<1x96xf32> to vector<8x96xf32>
    %95 = arith.addf %93, %94 : vector<8x96xf32>
    %96 = vector.extract_strided_slice %92 {offsets = [0, 0], sizes = [8, 32], strides = [1, 1]} : vector<8x96xf32> to vector<8x32xf32>
    %97 = vector.extract_strided_slice %95 {offsets = [0, 0], sizes = [8, 32], strides = [1, 1]} : vector<8x96xf32> to vector<8x32xf32>
    %98 = arith.addf %96, %97 : vector<8x32xf32>
    %99 = arith.negf %98 : vector<8x32xf32>
    %100 = math.exp %99 : vector<8x32xf32>
    %cst_22 = arith.constant 1.000000e+00 : f32
    %101 = vector.broadcast %cst_22 : f32 to vector<8x32xf32>
    %102 = arith.addf %101, %100 : vector<8x32xf32>
    %103 = arith.divf %101, %102 : vector<8x32xf32>
    %104 = vector.extract_strided_slice %92 {offsets = [0, 32], sizes = [8, 32], strides = [1, 1]} : vector<8x96xf32> to vector<8x32xf32>
    %105 = vector.extract_strided_slice %95 {offsets = [0, 32], sizes = [8, 32], strides = [1, 1]} : vector<8x96xf32> to vector<8x32xf32>
    %106 = arith.addf %104, %105 : vector<8x32xf32>
    %107 = arith.negf %106 : vector<8x32xf32>
    %108 = math.exp %107 : vector<8x32xf32>
    %cst_23 = arith.constant 1.000000e+00 : f32
    %109 = vector.broadcast %cst_23 : f32 to vector<8x32xf32>
    %110 = arith.addf %109, %108 : vector<8x32xf32>
    %111 = arith.divf %109, %110 : vector<8x32xf32>
    %112 = vector.extract_strided_slice %92 {offsets = [0, 64], sizes = [8, 32], strides = [1, 1]} : vector<8x96xf32> to vector<8x32xf32>
    %113 = vector.extract_strided_slice %95 {offsets = [0, 64], sizes = [8, 32], strides = [1, 1]} : vector<8x96xf32> to vector<8x32xf32>
    %114 = arith.mulf %103, %113 : vector<8x32xf32>
    %115 = arith.addf %112, %114 : vector<8x32xf32>
    %116 = math.tanh %115 : vector<8x32xf32>
    %cst_24 = arith.constant 1.000000e+00 : f32
    %117 = vector.broadcast %cst_24 : f32 to vector<8x32xf32>
    %118 = arith.subf %117, %111 : vector<8x32xf32>
    %119 = arith.mulf %118, %116 : vector<8x32xf32>
    %120 = arith.mulf %111, %89 : vector<8x32xf32>
    %121 = arith.addf %119, %120 : vector<8x32xf32>
    %122 = vector.broadcast %c2_i32 : i32 to vector<8x1xi32>
    %123 = arith.cmpi sgt, %2, %122 : vector<8x1xi32>
    %124 = arith.extui %123 : vector<8x1xi1> to vector<8x1xi32>
    %125 = arith.sitofp %124 : vector<8x1xi32> to vector<8x1xf32>
    %126 = vector.broadcast %125 : vector<8x1xf32> to vector<8x32xf32>
    %127 = arith.mulf %126, %121 : vector<8x32xf32>
    %cst_25 = arith.constant 1.000000e+00 : f32
    %128 = vector.broadcast %cst_25 : f32 to vector<8x1xf32>
    %129 = arith.subf %128, %125 : vector<8x1xf32>
    %130 = vector.broadcast %129 : vector<8x1xf32> to vector<8x32xf32>
    %131 = arith.mulf %130, %89 : vector<8x32xf32>
    %132 = arith.addf %127, %131 : vector<8x32xf32>
    %c3_i32 = arith.constant 3 : i32
    %133 = arith.index_cast %c3_i32 : i32 to index
    %c0_26 = arith.constant 0 : index
    %c0_27 = arith.constant 0 : index
    %134 = vector.load %arg1[%133, %c0_26, %c0_27] : memref<8x8x96xf32, #tpu.memory_space<vmem>>, vector<1x8x96xf32>
    %135 = vector.shape_cast %134 : vector<1x8x96xf32> to vector<8x96xf32>
    %cst_28 = arith.constant dense<0.000000e+00> : vector<8x96xf32>
    %136 = tpu.matmul %132, %0, %cst_28 {dimension_numbers = #tpu.dot_dimension_numbers<[1], [0], [0], [1], [0, 0, 1, 1], [], []>} : vector<8x32xf32>, vector<32x96xf32>, vector<8x96xf32> -> vector<8x96xf32>
    %137 = vector.broadcast %1 : vector<1x96xf32> to vector<8x96xf32>
    %138 = arith.addf %136, %137 : vector<8x96xf32>
    %139 = vector.extract_strided_slice %135 {offsets = [0, 0], sizes = [8, 32], strides = [1, 1]} : vector<8x96xf32> to vector<8x32xf32>
    %140 = vector.extract_strided_slice %138 {offsets = [0, 0], sizes = [8, 32], strides = [1, 1]} : vector<8x96xf32> to vector<8x32xf32>
    %141 = arith.addf %139, %140 : vector<8x32xf32>
    %142 = arith.negf %141 : vector<8x32xf32>
    %143 = math.exp %142 : vector<8x32xf32>
    %cst_29 = arith.constant 1.000000e+00 : f32
    %144 = vector.broadcast %cst_29 : f32 to vector<8x32xf32>
    %145 = arith.addf %144, %143 : vector<8x32xf32>
    %146 = arith.divf %144, %145 : vector<8x32xf32>
    %147 = vector.extract_strided_slice %135 {offsets = [0, 32], sizes = [8, 32], strides = [1, 1]} : vector<8x96xf32> to vector<8x32xf32>
    %148 = vector.extract_strided_slice %138 {offsets = [0, 32], sizes = [8, 32], strides = [1, 1]} : vector<8x96xf32> to vector<8x32xf32>
    %149 = arith.addf %147, %148 : vector<8x32xf32>
    %150 = arith.negf %149 : vector<8x32xf32>
    %151 = math.exp %150 : vector<8x32xf32>
    %cst_30 = arith.constant 1.000000e+00 : f32
    %152 = vector.broadcast %cst_30 : f32 to vector<8x32xf32>
    %153 = arith.addf %152, %151 : vector<8x32xf32>
    %154 = arith.divf %152, %153 : vector<8x32xf32>
    %155 = vector.extract_strided_slice %135 {offsets = [0, 64], sizes = [8, 32], strides = [1, 1]} : vector<8x96xf32> to vector<8x32xf32>
    %156 = vector.extract_strided_slice %138 {offsets = [0, 64], sizes = [8, 32], strides = [1, 1]} : vector<8x96xf32> to vector<8x32xf32>
    %157 = arith.mulf %146, %156 : vector<8x32xf32>
    %158 = arith.addf %155, %157 : vector<8x32xf32>
    %159 = math.tanh %158 : vector<8x32xf32>
    %cst_31 = arith.constant 1.000000e+00 : f32
    %160 = vector.broadcast %cst_31 : f32 to vector<8x32xf32>
    %161 = arith.subf %160, %154 : vector<8x32xf32>
    %162 = arith.mulf %161, %159 : vector<8x32xf32>
    %163 = arith.mulf %154, %132 : vector<8x32xf32>
    %164 = arith.addf %162, %163 : vector<8x32xf32>
    %165 = vector.broadcast %c3_i32 : i32 to vector<8x1xi32>
    %166 = arith.cmpi sgt, %2, %165 : vector<8x1xi32>
    %167 = arith.extui %166 : vector<8x1xi1> to vector<8x1xi32>
    %168 = arith.sitofp %167 : vector<8x1xi32> to vector<8x1xf32>
    %169 = vector.broadcast %168 : vector<8x1xf32> to vector<8x32xf32>
    %170 = arith.mulf %169, %164 : vector<8x32xf32>
    %cst_32 = arith.constant 1.000000e+00 : f32
    %171 = vector.broadcast %cst_32 : f32 to vector<8x1xf32>
    %172 = arith.subf %171, %168 : vector<8x1xf32>
    %173 = vector.broadcast %172 : vector<8x1xf32> to vector<8x32xf32>
    %174 = arith.mulf %173, %132 : vector<8x32xf32>
    %175 = arith.addf %170, %174 : vector<8x32xf32>
    %c4_i32 = arith.constant 4 : i32
    %176 = arith.index_cast %c4_i32 : i32 to index
    %c0_33 = arith.constant 0 : index
    %c0_34 = arith.constant 0 : index
    %177 = vector.load %arg1[%176, %c0_33, %c0_34] : memref<8x8x96xf32, #tpu.memory_space<vmem>>, vector<1x8x96xf32>
    %178 = vector.shape_cast %177 : vector<1x8x96xf32> to vector<8x96xf32>
    %cst_35 = arith.constant dense<0.000000e+00> : vector<8x96xf32>
    %179 = tpu.matmul %175, %0, %cst_35 {dimension_numbers = #tpu.dot_dimension_numbers<[1], [0], [0], [1], [0, 0, 1, 1], [], []>} : vector<8x32xf32>, vector<32x96xf32>, vector<8x96xf32> -> vector<8x96xf32>
    %180 = vector.broadcast %1 : vector<1x96xf32> to vector<8x96xf32>
    %181 = arith.addf %179, %180 : vector<8x96xf32>
    %182 = vector.extract_strided_slice %178 {offsets = [0, 0], sizes = [8, 32], strides = [1, 1]} : vector<8x96xf32> to vector<8x32xf32>
    %183 = vector.extract_strided_slice %181 {offsets = [0, 0], sizes = [8, 32], strides = [1, 1]} : vector<8x96xf32> to vector<8x32xf32>
    %184 = arith.addf %182, %183 : vector<8x32xf32>
    %185 = arith.negf %184 : vector<8x32xf32>
    %186 = math.exp %185 : vector<8x32xf32>
    %cst_36 = arith.constant 1.000000e+00 : f32
    %187 = vector.broadcast %cst_36 : f32 to vector<8x32xf32>
    %188 = arith.addf %187, %186 : vector<8x32xf32>
    %189 = arith.divf %187, %188 : vector<8x32xf32>
    %190 = vector.extract_strided_slice %178 {offsets = [0, 32], sizes = [8, 32], strides = [1, 1]} : vector<8x96xf32> to vector<8x32xf32>
    %191 = vector.extract_strided_slice %181 {offsets = [0, 32], sizes = [8, 32], strides = [1, 1]} : vector<8x96xf32> to vector<8x32xf32>
    %192 = arith.addf %190, %191 : vector<8x32xf32>
    %193 = arith.negf %192 : vector<8x32xf32>
    %194 = math.exp %193 : vector<8x32xf32>
    %cst_37 = arith.constant 1.000000e+00 : f32
    %195 = vector.broadcast %cst_37 : f32 to vector<8x32xf32>
    %196 = arith.addf %195, %194 : vector<8x32xf32>
    %197 = arith.divf %195, %196 : vector<8x32xf32>
    %198 = vector.extract_strided_slice %178 {offsets = [0, 64], sizes = [8, 32], strides = [1, 1]} : vector<8x96xf32> to vector<8x32xf32>
    %199 = vector.extract_strided_slice %181 {offsets = [0, 64], sizes = [8, 32], strides = [1, 1]} : vector<8x96xf32> to vector<8x32xf32>
    %200 = arith.mulf %189, %199 : vector<8x32xf32>
    %201 = arith.addf %198, %200 : vector<8x32xf32>
    %202 = math.tanh %201 : vector<8x32xf32>
    %cst_38 = arith.constant 1.000000e+00 : f32
    %203 = vector.broadcast %cst_38 : f32 to vector<8x32xf32>
    %204 = arith.subf %203, %197 : vector<8x32xf32>
    %205 = arith.mulf %204, %202 : vector<8x32xf32>
    %206 = arith.mulf %197, %175 : vector<8x32xf32>
    %207 = arith.addf %205, %206 : vector<8x32xf32>
    %208 = vector.broadcast %c4_i32 : i32 to vector<8x1xi32>
    %209 = arith.cmpi sgt, %2, %208 : vector<8x1xi32>
    %210 = arith.extui %209 : vector<8x1xi1> to vector<8x1xi32>
    %211 = arith.sitofp %210 : vector<8x1xi32> to vector<8x1xf32>
    %212 = vector.broadcast %211 : vector<8x1xf32> to vector<8x32xf32>
    %213 = arith.mulf %212, %207 : vector<8x32xf32>
    %cst_39 = arith.constant 1.000000e+00 : f32
    %214 = vector.broadcast %cst_39 : f32 to vector<8x1xf32>
    %215 = arith.subf %214, %211 : vector<8x1xf32>
    %216 = vector.broadcast %215 : vector<8x1xf32> to vector<8x32xf32>
    %217 = arith.mulf %216, %175 : vector<8x32xf32>
    %218 = arith.addf %213, %217 : vector<8x32xf32>
    %c5_i32 = arith.constant 5 : i32
    %219 = arith.index_cast %c5_i32 : i32 to index
    %c0_40 = arith.constant 0 : index
    %c0_41 = arith.constant 0 : index
    %220 = vector.load %arg1[%219, %c0_40, %c0_41] : memref<8x8x96xf32, #tpu.memory_space<vmem>>, vector<1x8x96xf32>
    %221 = vector.shape_cast %220 : vector<1x8x96xf32> to vector<8x96xf32>
    %cst_42 = arith.constant dense<0.000000e+00> : vector<8x96xf32>
    %222 = tpu.matmul %218, %0, %cst_42 {dimension_numbers = #tpu.dot_dimension_numbers<[1], [0], [0], [1], [0, 0, 1, 1], [], []>} : vector<8x32xf32>, vector<32x96xf32>, vector<8x96xf32> -> vector<8x96xf32>
    %223 = vector.broadcast %1 : vector<1x96xf32> to vector<8x96xf32>
    %224 = arith.addf %222, %223 : vector<8x96xf32>
    %225 = vector.extract_strided_slice %221 {offsets = [0, 0], sizes = [8, 32], strides = [1, 1]} : vector<8x96xf32> to vector<8x32xf32>
    %226 = vector.extract_strided_slice %224 {offsets = [0, 0], sizes = [8, 32], strides = [1, 1]} : vector<8x96xf32> to vector<8x32xf32>
    %227 = arith.addf %225, %226 : vector<8x32xf32>
    %228 = arith.negf %227 : vector<8x32xf32>
    %229 = math.exp %228 : vector<8x32xf32>
    %cst_43 = arith.constant 1.000000e+00 : f32
    %230 = vector.broadcast %cst_43 : f32 to vector<8x32xf32>
    %231 = arith.addf %230, %229 : vector<8x32xf32>
    %232 = arith.divf %230, %231 : vector<8x32xf32>
    %233 = vector.extract_strided_slice %221 {offsets = [0, 32], sizes = [8, 32], strides = [1, 1]} : vector<8x96xf32> to vector<8x32xf32>
    %234 = vector.extract_strided_slice %224 {offsets = [0, 32], sizes = [8, 32], strides = [1, 1]} : vector<8x96xf32> to vector<8x32xf32>
    %235 = arith.addf %233, %234 : vector<8x32xf32>
    %236 = arith.negf %235 : vector<8x32xf32>
    %237 = math.exp %236 : vector<8x32xf32>
    %cst_44 = arith.constant 1.000000e+00 : f32
    %238 = vector.broadcast %cst_44 : f32 to vector<8x32xf32>
    %239 = arith.addf %238, %237 : vector<8x32xf32>
    %240 = arith.divf %238, %239 : vector<8x32xf32>
    %241 = vector.extract_strided_slice %221 {offsets = [0, 64], sizes = [8, 32], strides = [1, 1]} : vector<8x96xf32> to vector<8x32xf32>
    %242 = vector.extract_strided_slice %224 {offsets = [0, 64], sizes = [8, 32], strides = [1, 1]} : vector<8x96xf32> to vector<8x32xf32>
    %243 = arith.mulf %232, %242 : vector<8x32xf32>
    %244 = arith.addf %241, %243 : vector<8x32xf32>
    %245 = math.tanh %244 : vector<8x32xf32>
    %cst_45 = arith.constant 1.000000e+00 : f32
    %246 = vector.broadcast %cst_45 : f32 to vector<8x32xf32>
    %247 = arith.subf %246, %240 : vector<8x32xf32>
    %248 = arith.mulf %247, %245 : vector<8x32xf32>
    %249 = arith.mulf %240, %218 : vector<8x32xf32>
    %250 = arith.addf %248, %249 : vector<8x32xf32>
    %251 = vector.broadcast %c5_i32 : i32 to vector<8x1xi32>
    %252 = arith.cmpi sgt, %2, %251 : vector<8x1xi32>
    %253 = arith.extui %252 : vector<8x1xi1> to vector<8x1xi32>
    %254 = arith.sitofp %253 : vector<8x1xi32> to vector<8x1xf32>
    %255 = vector.broadcast %254 : vector<8x1xf32> to vector<8x32xf32>
    %256 = arith.mulf %255, %250 : vector<8x32xf32>
    %cst_46 = arith.constant 1.000000e+00 : f32
    %257 = vector.broadcast %cst_46 : f32 to vector<8x1xf32>
    %258 = arith.subf %257, %254 : vector<8x1xf32>
    %259 = vector.broadcast %258 : vector<8x1xf32> to vector<8x32xf32>
    %260 = arith.mulf %259, %218 : vector<8x32xf32>
    %261 = arith.addf %256, %260 : vector<8x32xf32>
    %c6_i32 = arith.constant 6 : i32
    %262 = arith.index_cast %c6_i32 : i32 to index
    %c0_47 = arith.constant 0 : index
    %c0_48 = arith.constant 0 : index
    %263 = vector.load %arg1[%262, %c0_47, %c0_48] : memref<8x8x96xf32, #tpu.memory_space<vmem>>, vector<1x8x96xf32>
    %264 = vector.shape_cast %263 : vector<1x8x96xf32> to vector<8x96xf32>
    %cst_49 = arith.constant dense<0.000000e+00> : vector<8x96xf32>
    %265 = tpu.matmul %261, %0, %cst_49 {dimension_numbers = #tpu.dot_dimension_numbers<[1], [0], [0], [1], [0, 0, 1, 1], [], []>} : vector<8x32xf32>, vector<32x96xf32>, vector<8x96xf32> -> vector<8x96xf32>
    %266 = vector.broadcast %1 : vector<1x96xf32> to vector<8x96xf32>
    %267 = arith.addf %265, %266 : vector<8x96xf32>
    %268 = vector.extract_strided_slice %264 {offsets = [0, 0], sizes = [8, 32], strides = [1, 1]} : vector<8x96xf32> to vector<8x32xf32>
    %269 = vector.extract_strided_slice %267 {offsets = [0, 0], sizes = [8, 32], strides = [1, 1]} : vector<8x96xf32> to vector<8x32xf32>
    %270 = arith.addf %268, %269 : vector<8x32xf32>
    %271 = arith.negf %270 : vector<8x32xf32>
    %272 = math.exp %271 : vector<8x32xf32>
    %cst_50 = arith.constant 1.000000e+00 : f32
    %273 = vector.broadcast %cst_50 : f32 to vector<8x32xf32>
    %274 = arith.addf %273, %272 : vector<8x32xf32>
    %275 = arith.divf %273, %274 : vector<8x32xf32>
    %276 = vector.extract_strided_slice %264 {offsets = [0, 32], sizes = [8, 32], strides = [1, 1]} : vector<8x96xf32> to vector<8x32xf32>
    %277 = vector.extract_strided_slice %267 {offsets = [0, 32], sizes = [8, 32], strides = [1, 1]} : vector<8x96xf32> to vector<8x32xf32>
    %278 = arith.addf %276, %277 : vector<8x32xf32>
    %279 = arith.negf %278 : vector<8x32xf32>
    %280 = math.exp %279 : vector<8x32xf32>
    %cst_51 = arith.constant 1.000000e+00 : f32
    %281 = vector.broadcast %cst_51 : f32 to vector<8x32xf32>
    %282 = arith.addf %281, %280 : vector<8x32xf32>
    %283 = arith.divf %281, %282 : vector<8x32xf32>
    %284 = vector.extract_strided_slice %264 {offsets = [0, 64], sizes = [8, 32], strides = [1, 1]} : vector<8x96xf32> to vector<8x32xf32>
    %285 = vector.extract_strided_slice %267 {offsets = [0, 64], sizes = [8, 32], strides = [1, 1]} : vector<8x96xf32> to vector<8x32xf32>
    %286 = arith.mulf %275, %285 : vector<8x32xf32>
    %287 = arith.addf %284, %286 : vector<8x32xf32>
    %288 = math.tanh %287 : vector<8x32xf32>
    %cst_52 = arith.constant 1.000000e+00 : f32
    %289 = vector.broadcast %cst_52 : f32 to vector<8x32xf32>
    %290 = arith.subf %289, %283 : vector<8x32xf32>
    %291 = arith.mulf %290, %288 : vector<8x32xf32>
    %292 = arith.mulf %283, %261 : vector<8x32xf32>
    %293 = arith.addf %291, %292 : vector<8x32xf32>
    %294 = vector.broadcast %c6_i32 : i32 to vector<8x1xi32>
    %295 = arith.cmpi sgt, %2, %294 : vector<8x1xi32>
    %296 = arith.extui %295 : vector<8x1xi1> to vector<8x1xi32>
    %297 = arith.sitofp %296 : vector<8x1xi32> to vector<8x1xf32>
    %298 = vector.broadcast %297 : vector<8x1xf32> to vector<8x32xf32>
    %299 = arith.mulf %298, %293 : vector<8x32xf32>
    %cst_53 = arith.constant 1.000000e+00 : f32
    %300 = vector.broadcast %cst_53 : f32 to vector<8x1xf32>
    %301 = arith.subf %300, %297 : vector<8x1xf32>
    %302 = vector.broadcast %301 : vector<8x1xf32> to vector<8x32xf32>
    %303 = arith.mulf %302, %261 : vector<8x32xf32>
    %304 = arith.addf %299, %303 : vector<8x32xf32>
    %c7_i32 = arith.constant 7 : i32
    %305 = arith.index_cast %c7_i32 : i32 to index
    %c0_54 = arith.constant 0 : index
    %c0_55 = arith.constant 0 : index
    %306 = vector.load %arg1[%305, %c0_54, %c0_55] : memref<8x8x96xf32, #tpu.memory_space<vmem>>, vector<1x8x96xf32>
    %307 = vector.shape_cast %306 : vector<1x8x96xf32> to vector<8x96xf32>
    %cst_56 = arith.constant dense<0.000000e+00> : vector<8x96xf32>
    %308 = tpu.matmul %304, %0, %cst_56 {dimension_numbers = #tpu.dot_dimension_numbers<[1], [0], [0], [1], [0, 0, 1, 1], [], []>} : vector<8x32xf32>, vector<32x96xf32>, vector<8x96xf32> -> vector<8x96xf32>
    %309 = vector.broadcast %1 : vector<1x96xf32> to vector<8x96xf32>
    %310 = arith.addf %308, %309 : vector<8x96xf32>
    %311 = vector.extract_strided_slice %307 {offsets = [0, 0], sizes = [8, 32], strides = [1, 1]} : vector<8x96xf32> to vector<8x32xf32>
    %312 = vector.extract_strided_slice %310 {offsets = [0, 0], sizes = [8, 32], strides = [1, 1]} : vector<8x96xf32> to vector<8x32xf32>
    %313 = arith.addf %311, %312 : vector<8x32xf32>
    %314 = arith.negf %313 : vector<8x32xf32>
    %315 = math.exp %314 : vector<8x32xf32>
    %cst_57 = arith.constant 1.000000e+00 : f32
    %316 = vector.broadcast %cst_57 : f32 to vector<8x32xf32>
    %317 = arith.addf %316, %315 : vector<8x32xf32>
    %318 = arith.divf %316, %317 : vector<8x32xf32>
    %319 = vector.extract_strided_slice %307 {offsets = [0, 32], sizes = [8, 32], strides = [1, 1]} : vector<8x96xf32> to vector<8x32xf32>
    %320 = vector.extract_strided_slice %310 {offsets = [0, 32], sizes = [8, 32], strides = [1, 1]} : vector<8x96xf32> to vector<8x32xf32>
    %321 = arith.addf %319, %320 : vector<8x32xf32>
    %322 = arith.negf %321 : vector<8x32xf32>
    %323 = math.exp %322 : vector<8x32xf32>
    %cst_58 = arith.constant 1.000000e+00 : f32
    %324 = vector.broadcast %cst_58 : f32 to vector<8x32xf32>
    %325 = arith.addf %324, %323 : vector<8x32xf32>
    %326 = arith.divf %324, %325 : vector<8x32xf32>
    %327 = vector.extract_strided_slice %307 {offsets = [0, 64], sizes = [8, 32], strides = [1, 1]} : vector<8x96xf32> to vector<8x32xf32>
    %328 = vector.extract_strided_slice %310 {offsets = [0, 64], sizes = [8, 32], strides = [1, 1]} : vector<8x96xf32> to vector<8x32xf32>
    %329 = arith.mulf %318, %328 : vector<8x32xf32>
    %330 = arith.addf %327, %329 : vector<8x32xf32>
    %331 = math.tanh %330 : vector<8x32xf32>
    %cst_59 = arith.constant 1.000000e+00 : f32
    %332 = vector.broadcast %cst_59 : f32 to vector<8x32xf32>
    %333 = arith.subf %332, %326 : vector<8x32xf32>
    %334 = arith.mulf %333, %331 : vector<8x32xf32>
    %335 = arith.mulf %326, %304 : vector<8x32xf32>
    %336 = arith.addf %334, %335 : vector<8x32xf32>
    %337 = vector.broadcast %c7_i32 : i32 to vector<8x1xi32>
    %338 = arith.cmpi sgt, %2, %337 : vector<8x1xi32>
    %339 = arith.extui %338 : vector<8x1xi1> to vector<8x1xi32>
    %340 = arith.sitofp %339 : vector<8x1xi32> to vector<8x1xf32>
    %341 = vector.broadcast %340 : vector<8x1xf32> to vector<8x32xf32>
    %342 = arith.mulf %341, %336 : vector<8x32xf32>
    %cst_60 = arith.constant 1.000000e+00 : f32
    %343 = vector.broadcast %cst_60 : f32 to vector<8x1xf32>
    %344 = arith.subf %343, %340 : vector<8x1xf32>
    %345 = vector.broadcast %344 : vector<8x1xf32> to vector<8x32xf32>
    %346 = arith.mulf %345, %304 : vector<8x32xf32>
    %347 = arith.addf %342, %346 : vector<8x32xf32>
    %c8_i32 = arith.constant 8 : i32
    %c0_61 = arith.constant 0 : index
    %c0_62 = arith.constant 0 : index
    %348 = vector.load %arg3[%c0_61, %c0_62] : memref<8x1xf32, #tpu.memory_space<vmem>>, vector<8x1xf32>
    %349 = vector.broadcast %348 : vector<8x1xf32> to vector<8x32xf32>
    %350 = arith.mulf %347, %349 : vector<8x32xf32>
    %c0_63 = arith.constant 0 : index
    %c0_64 = arith.constant 0 : index
    %351 = vector.load %arg6[%c0_63, %c0_64] : memref<8x32xf32, #tpu.memory_space<vmem>>, vector<8x32xf32>
    tpu.vector_store %arg6[%c0_63, %c0_64], %350 {strides = array<i32>} : memref<8x32xf32, #tpu.memory_space<vmem>>, vector<8x32xf32>,
    return
  }
  func.func @transform_0(%arg0: i32) -> (i32, i32, i32) {
    %c0_i32 = arith.constant 0 : i32
    %c0_i32_0 = arith.constant 0 : i32
    %c0_i32_1 = arith.constant 0 : i32
    return %c0_i32, %arg0, %c0_i32_0 : i32, i32, i32
  }
  func.func @transform_1(%arg0: i32) -> (i32, i32) {
    %c0_i32 = arith.constant 0 : i32
    %c0_i32_0 = arith.constant 0 : i32
    return %arg0, %c0_i32 : i32, i32
  }
  func.func @transform_2(%arg0: i32) -> (i32, i32) {
    %c0_i32 = arith.constant 0 : i32
    %c0_i32_0 = arith.constant 0 : i32
    return %arg0, %c0_i32 : i32, i32
  }
  func.func @transform_3(%arg0: i32) -> (i32, i32) {
    %c0_i32 = arith.constant 0 : i32
    %c0_i32_0 = arith.constant 0 : i32
    %c0_i32_1 = arith.constant 0 : i32
    return %c0_i32, %c0_i32_0 : i32, i32
  }
  func.func @transform_4(%arg0: i32) -> (i32, i32) {
    %c0_i32 = arith.constant 0 : i32
    %c0_i32_0 = arith.constant 0 : i32
    %c0_i32_1 = arith.constant 0 : i32
    return %c0_i32, %c0_i32_0 : i32, i32
  }
  func.func @transform_5(%arg0: i32) -> (i32, i32) {
    %c0_i32 = arith.constant 0 : i32
    %c0_i32_0 = arith.constant 0 : i32
    return %arg0, %c0_i32 : i32, i32
  }
}

</mosaic_0001>

<bundles_post_ra>
// kernel: tpu_custom_call.1
= control target key start
LH: loop header
LB: loop body
LE: loop exit
PB: predicated region body
PF: predicated region fallthrough
CT: control target
= control target key end

     0   :  { %10 = vsyncpa [#allocation3], 0  ;;  %s1590_s0 = inlined_call_operand.hbm [shape: f32[8,16,96], index: 0, kind: input, shape index: {}]   ;;  %s1591_s1 = inlined_call_operand.vmem [shape: s32[16,1], index: 1, kind: input, shape index: {}]   ;;  %s1592_s2 = inlined_call_operand.vmem [shape: f32[16,1], index: 2, kind: input, shape index: {}]   ;;  %s1593_s3 = inlined_call_operand.vmem [shape: f32[32,96], index: 3, kind: input, shape index: {}]   ;;  %s1594_s4 = inlined_call_operand.vmem [shape: f32[1,96], index: 4, kind: input, shape index: {}]   ;;  %s1595_s5 = inlined_call_operand.hbm [shape: f32[16,32], index: 5, kind: output, shape index: {}]  }
   0x1   :  { %12 = vsyncpa [#allocation3 + $0x1], 0 }
   0x2   :  { %13 = vsyncpa [#allocation4], 0 }
   0x3   :  { %15 = vsyncpa [#allocation4 + $0x1], 0  ;;  %s1355_s18 = smov 0   ;;  %s1357_s19 = smov 0  }
   0x4   :  { %s1359_s20 = smov 0   ;;  %s1361_s21 = smov 0  }
   0x5 LB: > { %s1376_s22 = sadd.s32 4294967295, %s1316_s21   ;;  %s1071_s23 = sadd.s32 4294967294, %s1316_s21   ;;  %s1316_s21 = sphi %s1361_s21, %s1604_s21   ;;  %s1312_s20 = sphi %s1359_s20, %s1603_s20   ;;  %s1308_s19 = sphi %s1357_s19, %s1602_s19   ;;  %s1304_s18 = sphi %s1355_s18, %s1601_s18  }
   0x6   : > { %s1380_s24 = sadd.s32 1, %s1316_s21   ;;  %s28_s25 = sadd.s32 1, %s1312_s20 }
   0x7   : > { %s25_s26 = ssub.s32 %s1316_s21, %s1380_s24  ;;  %p35_p0 = scmp.ne.s32.totalorder %s1312_s20, %s1308_s19 }
   0x8   : > { %p26_p1 = scmp.eq.s32.totalorder %s25_s26, 0  ;;  %p36_p2 = scmp.eq.s32.totalorder %s1316_s21, 0 }
   0x9   : > { %p41_p3 = scmp.ne.s32.totalorder %s1308_s19, %s1304_s18  ;;  %p42_p4 = scmp.eq.s32.totalorder %s1376_s22, 0 }
   0xa   : > { %s1392_s27 = scalar_select %p26_p1, %s1312_s20, %s28_s25  }
   0xb   : > { %p1394_p5 = por %p36_p2, %p35_p0  ;;  %p1398_p6 = por %p42_p4, %p41_p3 }
   0xc   : > { %p159_p7 = scmp.eq.s32.totalorder %s1376_s22, 1  ;;  %p165_p8 = scmp.eq.s32.totalorder %s1071_s23, 1 }
   0xd   : > { %p1073_p9 = scmp.ge.s32.totalorder %s1316_s21, 2  ;;  %p1127_p10 = scmp.lt.s32.totalorder %s1316_s21, 2 }
   0xe   : > { %p1405_p11 = por %p159_p7, %p35_p0  ;;  %p1409_p12 = por %p165_p8, %p41_p3 }
   0xf   : > { %s191_s7 = sand.u32 1, %s1312_s20   ;;  %s1075_s8 = sshll.u32 %s1316_s21, 3 }
  0x10   : > { %s1074_s9 = sshll.u32 %s191_s7, 6  ;;  %s199_s12 = scalar_lea.hbm %s1590_s0, %s1075_s8 }
  0x11   : > { %s200_s13 = sshll.u32 %s199_s12, 4  ;;  %s195_s14 = scalar_lea.vmem [#allocation2], %s1074_s9  ;;  %s201_s13 = int_to_ptr.hbm [resolvable:$true] %s200_s13 }
  0x12   : > { %s202_s15 = sshll.u32 %s195_s14, 4  ;;  %p1420_p13 = pnand %p1127_p10, %p1394_p5  ;;  %s203_s15 = int_to_ptr.vmem [resolvable:$true] %s202_s15 }
  0x13   : > { %p1076_p0 = scmp.ge.s32.totalorder %s1316_s21, 1  ;;  %s192_s17 = scalar_lea.sflag [#allocation3], %s191_s7 }
  0x14   : > { %s1220_s23 = sshra.s32 %s201_s13, 4  ;;  %p1224_p2 = pneg %p1420_p13  ;;  %s1221_s23 = int_to_ptr.hbm [resolvable:$true] %s1220_s23 }
  0x15   : > { %s1222_s25 = scalar_lea.hbm %s1221_s23, 64  ;;  %s1227_s9 = scalar_lea.hbm %s1590_s0, 128 }
  0x16   : > { %p1223_p1 = scmp.ne.s32.totalorder %s1221_s23, %s1222_s25  ;;  %p1228_p5 = scmp.lt.s32.totalorder %s1221_s23, %s1590_s0 }
  0x17   : > { %p1229_p7 = scmp.lt.s32.totalorder %s1227_s9, %s1222_s25 }
  0x18   : > { %p1225_p3 = pnand %p1224_p2, %p1223_p1 }
  0x19   : > { %p1230_p8 = por %p1229_p7, %p1228_p5 }
  0x1a   : > { %p1226_p4 = pneg %p1225_p3 }
  0x1c   : > { %p1231_p10 = pnand %p1230_p8, %p1226_p4 }
  0x1e   : > { %1234 = shalt.err (!%p1231_p10)
}
  0x1f   : > { %s1318_s7 = smov 256   ;;  %s1319_s11 = smov 128  }
  0x20   : > { %s1320_s12 = smov 8   ;;  %p224_p1 = scmp.lt.s32.totalorder %s1316_s21, 3 }
  0x21   : > { %1122 = dma.hbm_to_vmem [thread:$0]  (!%p1420_p13), %s201_s13, 1024, %s203_s15, %s192_s17, %s1318_s7, %s1319_s11, %s1320_s12  }
  0x22   : > { %p225_p2 = pnand %p1076_p0, %p224_p1 }
  0x23   : > { %s1439_s14 = sand.u32 (!%p225_p2), 1, %s1308_s19  }
  0x24   : > { %228 = sbr.rel (%p225_p2) target bundleno = 4723 (0x1273), region = 40  ;;  %s1077_s23 = sshll.u32 (!%p225_p2), %s1439_s14, 6 }
  0x25   : > { %s231_s25 = scalar_lea.sflag (!%p225_p2), [#allocation3], %s1439_s14  ;;  %s1443_s26 = scalar_lea.vmem (!%p225_p2), [#allocation2], %s1077_s23 }
  0x29   : > { %1295 = dma.done.wait (%p1398_p6), %s231_s25, 1024  }
  0x2a   : > { %1297 = vsyncadd (%p1398_p6), %s231_s25, 4294966272  ;;  %v281_v0 = vld [vmem:[%s1593_s3 + $0x18] sm:$0xff]  ;;  %v280_v1 = vld [vmem:[%s1593_s3 + $0x10] sm:$0xff]  ;;  %v1321_v4 = vmov 0.0   ;;  %s1322_s11 = smov 64   ;;  %p270_p6 = scmp.lt.s32.totalorder %s1376_s22, 1 }
  0x2b   : > { %304 = vmatpush.msra.mxu0 %v281_v0  ;;  %387 = vmatpush.msra.mxu1 %v281_v0  ;;  %v279_v2 = vld [vmem:[%s1593_s3 + $0x8] sm:$0xff]  ;;  %v278_v3 = vld [vmem:[%s1593_s3] sm:$0xff]  ;;  %v1323_v25 = vmov 0   ;;  %s1324_s16 = smov 96   ;;  %vm288_vm5 = vcmask 261120   ;;  %s1078_s9 = sshll.u32 %s1439_s14, 3 }
  0x2c   : > { %470 = vmatpush.msra.mxu2 %v281_v0  ;;  %553 = vmatpush.msra.mxu3 %v281_v0  ;;  %v1465_v5 = vld [vmem:[%s1594_s4] ss:$0 sm:$0xff]  ;;  %s1473_s12 = scalar_select %p270_p6, %s1376_s22, 1  ;;  %v1083_v45 = vld [vmem:[%s1443_s26 + $0x8] sm:$0xff] }
  0x2d   : > { %305 = vmatpush.msra.mxu0 %v280_v1  ;;  %388 = vmatpush.msra.mxu1 %v280_v1  ;;  %v284_v8 = vld [vmem:[%s1443_s26] sm:$0xff]  ;;  %s1112_s29 = sshll.u32 %s1376_s22, 3  ;;  %s962_s25 = scalar_lea.sflag [#allocation4], %s1439_s14 }
  0x2e   : > { %471 = vmatpush.msra.mxu2 %v280_v1  ;;  %554 = vmatpush.msra.mxu3 %v280_v1  ;;  %s1079_s23 = sshll.u32 %s1473_s12, 3  ;;  %s972_s7 = scalar_lea.hbm %s1595_s5, %s1112_s29 }
  0x2f   : > { %306 = vmatpush.msra.mxu0 %v279_v2  ;;  %389 = vmatpush.msra.mxu1 %v279_v2  ;;  %s273_s15 = scalar_lea.vmem %s1591_s1, %s1079_s23  ;;  %s277_s8 = scalar_lea.vmem %s1592_s2, %s1079_s23 }
  0x30   : > { %472 = vmatpush.msra.mxu2 %v279_v2  ;;  %555 = vmatpush.msra.mxu3 %v279_v2  ;;  %v1481_v26 = vld [vmem:[%s273_s15] sm:$0xff]  ;;  %s976_s23 = sshll.u32 %s972_s7, 4  ;;  %s977_s23 = int_to_ptr.hbm [resolvable:$true] %s976_s23 }
  0x31   : > { %307 = vmatpush.msra.mxu0 %v278_v3  ;;  %390 = vmatpush.msra.mxu1 %v278_v3  ;;  %vm351_vm4 = vcmp.gt.s32.totalorder %v1481_v26, 0  ;;  %vm434_vm6 = vcmp.gt.s32.totalorder %v1481_v26, 1  ;;  %vm517_vm11 = vcmp.gt.s32.totalorder %v1481_v26, 2  ;;  %s1264_s13 = sshra.s32 %s977_s23, 4  ;;  %s1265_s13 = int_to_ptr.hbm [resolvable:$true] %s1264_s13 }
  0x32   : > { %308 = vmatmul.f32.vlgmr.msra.gmra.mxu0 %v1321_v4  ;;  %473 = vmatpush.msra.mxu2 %v278_v3  ;;  %v1082_v27 = vsel %vm351_vm4, 1.0, %v1321_v4  ;;  %v1086_v50 = vsel %vm434_vm6, 1.0, %v1321_v4  ;;  %vm683_vm6 = vcmp.gt.s32.totalorder %v1481_v26, 4  ;;  %s1266_s15 = scalar_lea.hbm %s1265_s13, 8  ;;  %p1271_p4 = scmp.lt.s32.totalorder %s1265_s13, %s1595_s5 }
  0x33   : > { %556 = vmatpush.msra.mxu3 %v278_v3  ;;  %636 = vmatpush.msrb.mxu0 %v281_v0  ;;  %v360_v28 = vsub.f32 1.0, %v1082_v27  ;;  %v443_v63 = vsub.f32 1.0, %v1086_v50  ;;  %p1267_p13 = scmp.ne.s32.totalorder %s1265_s13, %s1266_s15 }
  0x34   : > { %719 = vmatpush.msrb.mxu1 %v281_v0  ;;  %802 = vmatpush.msrb.mxu2 %v281_v0 }
  0x35   : > { %637 = vmatpush.msrb.mxu0 %v280_v1  ;;  %885 = vmatpush.msrb.mxu3 %v281_v0  ;;  %p1268_p0 = pnand %p1267_p13, %p1405_p11 }
  0x36   : > { %720 = vmatpush.msrb.mxu1 %v280_v1  ;;  %803 = vmatpush.msrb.mxu2 %v280_v1 }
  0x37   : > { %638 = vmatpush.msrb.mxu0 %v279_v2  ;;  %886 = vmatpush.msrb.mxu3 %v280_v1  ;;  %p1269_p3 = pneg %p1268_p0 }
  0x38   : > { %721 = vmatpush.msrb.mxu1 %v279_v2  ;;  %804 = vmatpush.msrb.mxu2 %v279_v2 }
  0x39   : > { %639 = vmatpush.msrb.mxu0 %v278_v3  ;;  %887 = vmatpush.msrb.mxu3 %v279_v2 }
  0x3a   : > { %722 = vmatpush.msrb.mxu1 %v278_v3  ;;  %805 = vmatpush.msrb.mxu2 %v278_v3 }
  0x3b   : > { %888 = vmatpush.msrb.mxu3 %v278_v3  ;;  %1168 = vset.pattern.permute.xlu1 %v1323_v25 }
  0x3c   : > { %1169 = vset.pattern.permute.xlu2 %v1323_v25  ;;  %1170 = vset.pattern.permute.xlu0 %v1323_v25 }
  0x3d   : > { %363 = vperm.xlu2 %1169, %v360_v28  }
  0x97   : > { %v364_v35 = vpop.permute.xlu2 %363 }
  0x98   : > { %v366_v37 = vmul.f32 0.0, %v364_v35 }
  0xaf   : > { %v309_v6 = vpop.f32.mrf.mxu0 }
  0xb0   : > { %v310_v7 = vadd.f32 %v1465_v5, %v309_v6 }
  0xb2   : > { %333 = vrot.lane.b32.xlu0 %v310_v7, %s1322_s11  ;;  %v312_v9 = vadd.f32 %v310_v7, %v284_v8 }
  0xb4   : > { %v1081_v10 = vmul.f32 -1.442695, %v312_v9 }
  0xb6   : > { %1172 = vpow2.f32 %v1081_v10 }
  0xbc   : > { %v1173_v11 = vpop.eup %1172 }
  0xbd   : > { %v316_v12 = vadd.f32 1.0, %v1173_v11 }
  0xbf   : > { %1174 = vrcp.f32 %v316_v12  ;;  %v328_v18 = vand.u32 2147483648, %v316_v12  ;;  %vm322_vm1 = vweird.f32 %v316_v12  ;;  %v326_v19 = vand.u32 2147483647, %v316_v12 }
  0xc1   : > { %v329_v21 = vor.u32 1.1754944e-38, %v328_v18  ;;  %vm327_vm3 = vcmp.eq.f32.partialorder %v326_v19, 8.507059e+37  ;;  %v1090_v18 = vsel %vm517_vm11, 1.0, %v1321_v4  ;;  %v1087_v19 = vld [vmem:[%s1443_s26 + $0x10] sm:$0xff]  ;;  %vm766_vm11 = vcmp.gt.s32.totalorder %v1481_v26, 5 }
  0xc5   : > { %v1175_v13 = vpop.eup %1174 }
  0xc6   : > { %v318_v14 = vmul.f32 %v1175_v13, %v316_v12  ;;  %vm323_vm0 = vweird.f32 %v1175_v13 }
  0xc7   : > { %vm324_vm2 = vmor %vm322_vm1, %vm323_vm0  ;;  %vm600_vm0 = vcmp.gt.s32.totalorder %v1481_v26, 3 }
  0xc8   : > { %v319_v15 = vsub.f32 1.0, %v318_v14 }
  0xca   : > { %v320_v16 = vmul.f32 %v1175_v13, %v319_v15 }
  0xcc   : > { %v321_v17 = vadd.f32 %v1175_v13, %v320_v16 }
  0xce   : > { %v325_v20 = vsel %vm324_vm2, %v1175_v13, %v321_v17 }
  0xcf   : > { %v330_v23 = vsel %vm327_vm3, %v329_v21, %v325_v20 }
  0xd0   : > { %v343_v33 = vsub.f32 1.0, %v330_v23  ;;  %v349_v36 = vmul.f32 0.0, %v330_v23 }
 0x124   : > { %v334_v22 = vpop.permute.xlu0 %333 }
 0x125   : > { %v336_v24 = vmul.f32 %v334_v22, %v330_v23 }
 0x127   : > { %338 = vrot.lane.b32.xlu0 %v336_v24, %s1322_s11 }
 0x199   : > { %v339_v29 = vpop.permute.xlu0 %338 }
 0x19a   : > { %v341_v30 = vadd.f32 %v339_v29, %v284_v8 }
 0x19c   : > { %1176 = vtanh.f32 %v341_v30 }
 0x1a2   : > { %v1177_v31 = vpop.eup %1176 }
 0x1a3   : > { %345 = vrot.lane.b32.xlu1 %v1177_v31, %s1324_s16 }
 0x1ab   : > { %356 = vperm.xlu1 %1168, %v1082_v27  }
 0x215   : > { %v346_v32 = vpop.permute.xlu1 %345 }
 0x216   : > { %v348_v34 = vmul.f32 %v346_v32, %v343_v33 }
 0x218   : > { %v350_v38 = vadd.f32 %v349_v36, %v348_v34 }
 0x21d   : > { %v357_v39 = vpop.permute.xlu1 %356 }
 0x21e   : > { %v359_v40 = vmul.f32 %v357_v39, %v350_v38 }
 0x220   : > { %v367_v41 = vadd.f32 %v366_v37, %v359_v40  ;;  %v526_v37 = vsub.f32 1.0, %v1090_v18 }
 0x222   : > { %371 = vrot.lane.b32.xlu2 %v367_v41, %s1324_s16 }
 0x27c   : > { %v372_v42 = vpop.permute.xlu2 %371 }
 0x27d   : > { %1084 = vmatmul.msk.f32.vlgmr.msra.gmra.mxu1 %vm288_vm5, %v372_v42 }
 0x2fa   : > { %v392_v43 = vpop.f32.mrf.mxu1 }
 0x2fb   : > { %v393_v44 = vadd.f32 %v1465_v5, %v392_v43 }
 0x2fd   : > { %416 = vrot.lane.b32.xlu0 %v393_v44, %s1322_s11  ;;  %v395_v46 = vadd.f32 %v1083_v45, %v393_v44 }
 0x2ff   : > { %v1085_v47 = vmul.f32 -1.442695, %v395_v46 }
 0x301   : > { %1178 = vpow2.f32 %v1085_v47 }
 0x305   : > { %439 = vperm.xlu0 %1170, %v1086_v50  }
 0x307   : > { %v1179_v48 = vpop.eup %1178 }
 0x308   : > { %v399_v49 = vadd.f32 1.0, %v1179_v48 }
 0x30a   : > { %1180 = vrcp.f32 %v399_v49  ;;  %v411_v56 = vand.u32 2147483648, %v399_v49  ;;  %vm405_vm8 = vweird.f32 %v399_v49  ;;  %v409_v57 = vand.u32 2147483647, %v399_v49 }
 0x30c   : > { %v412_v59 = vor.u32 1.1754944e-38, %v411_v56  ;;  %vm410_vm10 = vcmp.eq.f32.partialorder %v409_v57, 8.507059e+37 }
 0x310   : > { %v1181_v51 = vpop.eup %1180 }
 0x311   : > { %v401_v52 = vmul.f32 %v1181_v51, %v399_v49  ;;  %vm406_vm7 = vweird.f32 %v1181_v51 }
 0x312   : > { %vm407_vm9 = vmor %vm405_vm8, %vm406_vm7 }
 0x313   : > { %v402_v53 = vsub.f32 1.0, %v401_v52 }
 0x315   : > { %v403_v54 = vmul.f32 %v1181_v51, %v402_v53 }
 0x317   : > { %v404_v55 = vadd.f32 %v1181_v51, %v403_v54  ;;  %v1094_v54 = vsel %vm600_vm0, 1.0, %v1321_v4  ;;  %vm849_vm0 = vcmp.gt.s32.totalorder %v1481_v26, 6 }
 0x319   : > { %v408_v58 = vsel %vm407_vm9, %v1181_v51, %v404_v55  ;;  %v1091_v55 = vld [vmem:[%s1443_s26 + $0x18] sm:$0xff] }
 0x31a   : > { %v413_v61 = vsel %vm410_vm10, %v412_v59, %v408_v58 }
 0x31b   : > { %v426_v3 = vsub.f32 1.0, %v413_v61  ;;  %v432_v8 = vmul.f32 %v413_v61, %v367_v41 }
 0x36f   : > { %v417_v60 = vpop.permute.xlu0 %416 }
 0x370   : > { %v419_v62 = vmul.f32 %v417_v60, %v413_v61 }
 0x372   : > { %421 = vrot.lane.b32.xlu1 %v419_v62, %s1322_s11 }
 0x377   : > { %v440_v10 = vpop.permute.xlu0 %439 }
 0x37a   : > { %446 = vperm.xlu1 %1168, %v443_v63  }
 0x3e4   : > { %v422_v0 = vpop.permute.xlu1 %421 }
 0x3e5   : > { %v424_v1 = vadd.f32 %v1083_v45, %v422_v0 }
 0x3e7   : > { %1182 = vtanh.f32 %v424_v1 }
 0x3ec   : > { %v447_v9 = vpop.permute.xlu1 %446 }
 0x3ed   : > { %v1183_v2 = vpop.eup %1182  ;;  %v449_v12 = vmul.f32 %v447_v9, %v367_v41 }
 0x3ee   : > { %428 = vrot.lane.b32.xlu2 %v1183_v2, %s1324_s16 }
 0x448   : > { %v429_v6 = vpop.permute.xlu2 %428 }
 0x449   : > { %v431_v7 = vmul.f32 %v429_v6, %v426_v3 }
 0x44b   : > { %v433_v11 = vadd.f32 %v432_v8, %v431_v7 }
 0x44d   : > { %v442_v13 = vmul.f32 %v440_v10, %v433_v11  ;;  %v609_v10 = vsub.f32 1.0, %v1094_v54 }
 0x44f   : > { %v450_v14 = vadd.f32 %v449_v12, %v442_v13 }
 0x451   : > { %454 = vrot.lane.b32.xlu2 %v450_v14, %s1324_s16 }
 0x4ab   : > { %v455_v15 = vpop.permute.xlu2 %454 }
 0x4ac   : > { %1088 = vmatmul.msk.f32.vlgmr.msra.gmra.mxu2 %vm288_vm5, %v455_v15 }
 0x52f   : > { %v475_v16 = vpop.f32.mrf.mxu2 }
 0x530   : > { %v476_v17 = vadd.f32 %v1465_v5, %v475_v16 }
 0x532   : > { %499 = vrot.lane.b32.xlu1 %v476_v17, %s1322_s11  ;;  %v478_v20 = vadd.f32 %v1087_v19, %v476_v17 }
 0x534   : > { %v1089_v21 = vmul.f32 -1.442695, %v478_v20 }
 0x536   : > { %1184 = vpow2.f32 %v1089_v21 }
 0x53a   : > { %522 = vperm.xlu1 %1168, %v1090_v18  }
 0x53c   : > { %v1185_v22 = vpop.eup %1184 }
 0x53d   : > { %v482_v23 = vadd.f32 1.0, %v1185_v22 }
 0x53f   : > { %1186 = vrcp.f32 %v482_v23  ;;  %v494_v30 = vand.u32 2147483648, %v482_v23  ;;  %vm488_vm13 = vweird.f32 %v482_v23  ;;  %v492_v31 = vand.u32 2147483647, %v482_v23 }
 0x541   : > { %v495_v33 = vor.u32 1.1754944e-38, %v494_v30  ;;  %vm493_vm15 = vcmp.eq.f32.partialorder %v492_v31, 8.507059e+37 }
 0x545   : > { %v1187_v24 = vpop.eup %1186 }
 0x546   : > { %v484_v25 = vmul.f32 %v1187_v24, %v482_v23  ;;  %vm489_vm12 = vweird.f32 %v1187_v24 }
 0x547   : > { %vm490_vm14 = vmor %vm488_vm13, %vm489_vm12 }
 0x548   : > { %v485_v27 = vsub.f32 1.0, %v484_v25 }
 0x54a   : > { %v486_v28 = vmul.f32 %v1187_v24, %v485_v27 }
 0x54c   : > { %v487_v29 = vadd.f32 %v1187_v24, %v486_v28  ;;  %v1098_v28 = vsel %vm683_vm6, 1.0, %v1321_v4  ;;  %vm932_vm6 = vcmp.gt.s32.totalorder %v1481_v26, 7 }
 0x54e   : > { %v491_v32 = vsel %vm490_vm14, %v1187_v24, %v487_v29  ;;  %v1095_v29 = vld [vmem:[%s1443_s26 + $0x20] sm:$0xff] }
 0x54f   : > { %v496_v35 = vsel %vm493_vm15, %v495_v33, %v491_v32 }
 0x550   : > { %v509_v41 = vsub.f32 1.0, %v496_v35  ;;  %v515_v43 = vmul.f32 %v496_v35, %v450_v14 }
 0x5a4   : > { %v500_v34 = vpop.permute.xlu1 %499 }
 0x5a5   : > { %v502_v36 = vmul.f32 %v500_v34, %v496_v35 }
 0x5a7   : > { %504 = vrot.lane.b32.xlu2 %v502_v36, %s1322_s11 }
 0x5ac   : > { %v523_v47 = vpop.permute.xlu1 %522 }
 0x5af   : > { %529 = vperm.xlu2 %1169, %v526_v37  }
 0x601   : > { %v505_v38 = vpop.permute.xlu2 %504 }
 0x602   : > { %v507_v39 = vadd.f32 %v1087_v19, %v505_v38 }
 0x604   : > { %1188 = vtanh.f32 %v507_v39 }
 0x609   : > { %v530_v45 = vpop.permute.xlu2 %529 }
 0x60a   : > { %v1189_v40 = vpop.eup %1188  ;;  %v532_v48 = vmul.f32 %v530_v45, %v450_v14 }
 0x60b   : > { %511 = vrot.lane.b32.xlu0 %v1189_v40, %s1324_s16 }
 0x67d   : > { %v512_v42 = vpop.permute.xlu0 %511 }
 0x67e   : > { %v514_v44 = vmul.f32 %v512_v42, %v509_v41 }
 0x680   : > { %v516_v46 = vadd.f32 %v515_v43, %v514_v44 }
 0x682   : > { %v525_v49 = vmul.f32 %v523_v47, %v516_v46  ;;  %v692_v46 = vsub.f32 1.0, %v1098_v28 }
 0x684   : > { %v533_v50 = vadd.f32 %v532_v48, %v525_v49 }
 0x686   : > { %537 = vrot.lane.b32.xlu0 %v533_v50, %s1324_s16 }
 0x6f8   : > { %v538_v51 = vpop.permute.xlu0 %537 }
 0x6f9   : > { %1092 = vmatmul.msk.f32.vlgmr.msra.gmra.mxu3 %vm288_vm5, %v538_v51 }
 0x77c   : > { %v558_v52 = vpop.f32.mrf.mxu3 }
 0x77d   : > { %v559_v53 = vadd.f32 %v1465_v5, %v558_v52 }
 0x77f   : > { %582 = vrot.lane.b32.xlu1 %v559_v53, %s1322_s11  ;;  %v561_v56 = vadd.f32 %v1091_v55, %v559_v53 }
 0x781   : > { %v1093_v57 = vmul.f32 -1.442695, %v561_v56 }
 0x783   : > { %1190 = vpow2.f32 %v1093_v57 }
 0x787   : > { %605 = vperm.xlu1 %1168, %v1094_v54  }
 0x789   : > { %v1191_v58 = vpop.eup %1190 }
 0x78a   : > { %v565_v59 = vadd.f32 1.0, %v1191_v58 }
 0x78c   : > { %1192 = vrcp.f32 %v565_v59  ;;  %v577_v1 = vand.u32 2147483648, %v565_v59  ;;  %vm571_vm2 = vweird.f32 %v565_v59  ;;  %v575_v2 = vand.u32 2147483647, %v565_v59 }
 0x78e   : > { %v578_v6 = vor.u32 1.1754944e-38, %v577_v1  ;;  %vm576_vm4 = vcmp.eq.f32.partialorder %v575_v2, 8.507059e+37 }
 0x792   : > { %v1193_v60 = vpop.eup %1192 }
 0x793   : > { %v567_v61 = vmul.f32 %v1193_v60, %v565_v59  ;;  %vm572_vm1 = vweird.f32 %v1193_v60 }
 0x794   : > { %vm573_vm3 = vmor %vm571_vm2, %vm572_vm1 }
 0x795   : > { %v568_v62 = vsub.f32 1.0, %v567_v61 }
 0x797   : > { %v569_v63 = vmul.f32 %v1193_v60, %v568_v62 }
 0x799   : > { %v570_v0 = vadd.f32 %v1193_v60, %v569_v63  ;;  %v1102_v63 = vsel %vm766_vm11, 1.0, %v1321_v4 }
 0x79b   : > { %v574_v3 = vsel %vm573_vm3, %v1193_v60, %v570_v0  ;;  %v1099_v0 = vld [vmem:[%s1443_s26 + $0x28] sm:$0xff] }
 0x79c   : > { %v579_v8 = vsel %vm576_vm4, %v578_v6, %v574_v3 }
 0x79d   : > { %v592_v14 = vsub.f32 1.0, %v579_v8  ;;  %v598_v16 = vmul.f32 %v579_v8, %v533_v50 }
 0x7f1   : > { %v583_v7 = vpop.permute.xlu1 %582 }
 0x7f2   : > { %v585_v9 = vmul.f32 %v583_v7, %v579_v8 }
 0x7f4   : > { %587 = vrot.lane.b32.xlu2 %v585_v9, %s1322_s11 }
 0x7f9   : > { %v606_v20 = vpop.permute.xlu1 %605 }
 0x7fc   : > { %612 = vperm.xlu2 %1169, %v609_v10  }
 0x84e   : > { %v588_v11 = vpop.permute.xlu2 %587 }
 0x84f   : > { %v590_v12 = vadd.f32 %v1091_v55, %v588_v11 }
 0x851   : > { %1194 = vtanh.f32 %v590_v12 }
 0x856   : > { %v613_v18 = vpop.permute.xlu2 %612 }
 0x857   : > { %v1195_v13 = vpop.eup %1194  ;;  %v615_v21 = vmul.f32 %v613_v18, %v533_v50 }
 0x858   : > { %594 = vrot.lane.b32.xlu0 %v1195_v13, %s1324_s16 }
 0x8ca   : > { %v595_v15 = vpop.permute.xlu0 %594 }
 0x8cb   : > { %v597_v17 = vmul.f32 %v595_v15, %v592_v14 }
 0x8cd   : > { %v599_v19 = vadd.f32 %v598_v16, %v597_v17 }
 0x8cf   : > { %v608_v22 = vmul.f32 %v606_v20, %v599_v19  ;;  %v775_v19 = vsub.f32 1.0, %v1102_v63 }
 0x8d1   : > { %v616_v23 = vadd.f32 %v615_v21, %v608_v22 }
 0x8d3   : > { %620 = vrot.lane.b32.xlu0 %v616_v23, %s1324_s16 }
 0x945   : > { %v621_v24 = vpop.permute.xlu0 %620 }
 0x946   : > { %1096 = vmatmul.msk.f32.vlgmr.msrb.gmra.mxu0 %vm288_vm5, %v621_v24 }
 0x9c3   : > { %v641_v25 = vpop.f32.mrf.mxu0 }
 0x9c4   : > { %v642_v27 = vadd.f32 %v1465_v5, %v641_v25 }
 0x9c6   : > { %665 = vrot.lane.b32.xlu1 %v642_v27, %s1322_s11  ;;  %v644_v30 = vadd.f32 %v1095_v29, %v642_v27 }
 0x9c8   : > { %v1097_v31 = vmul.f32 -1.442695, %v644_v30 }
 0x9ca   : > { %1196 = vpow2.f32 %v1097_v31 }
 0x9ce   : > { %688 = vperm.xlu1 %1168, %v1098_v28  }
 0x9d0   : > { %v1197_v32 = vpop.eup %1196 }
 0x9d1   : > { %v648_v33 = vadd.f32 1.0, %v1197_v32 }
 0x9d3   : > { %1198 = vrcp.f32 %v648_v33  ;;  %v660_v39 = vand.u32 2147483648, %v648_v33  ;;  %vm654_vm8 = vweird.f32 %v648_v33  ;;  %v658_v40 = vand.u32 2147483647, %v648_v33 }
 0x9d5   : > { %v661_v42 = vor.u32 1.1754944e-38, %v660_v39  ;;  %vm659_vm10 = vcmp.eq.f32.partialorder %v658_v40, 8.507059e+37 }
 0x9d9   : > { %v1199_v34 = vpop.eup %1198 }
 0x9da   : > { %v650_v35 = vmul.f32 %v1199_v34, %v648_v33  ;;  %vm655_vm7 = vweird.f32 %v1199_v34 }
 0x9db   : > { %vm656_vm9 = vmor %vm654_vm8, %vm655_vm7 }
 0x9dc   : > { %v651_v36 = vsub.f32 1.0, %v650_v35 }
 0x9de   : > { %v652_v37 = vmul.f32 %v1199_v34, %v651_v36 }
 0x9e0   : > { %v653_v38 = vadd.f32 %v1199_v34, %v652_v37  ;;  %v1106_v37 = vsel %vm849_vm0, 1.0, %v1321_v4 }
 0x9e2   : > { %v657_v41 = vsel %vm656_vm9, %v1199_v34, %v653_v38  ;;  %v1103_v38 = vld [vmem:[%s1443_s26 + $0x30] sm:$0xff] }
 0x9e3   : > { %v662_v44 = vsel %vm659_vm10, %v661_v42, %v657_v41 }
 0x9e4   : > { %v675_v50 = vsub.f32 1.0, %v662_v44  ;;  %v681_v52 = vmul.f32 %v662_v44, %v616_v23 }
 0xa38   : > { %v666_v43 = vpop.permute.xlu1 %665 }
 0xa39   : > { %v668_v45 = vmul.f32 %v666_v43, %v662_v44 }
 0xa3b   : > { %670 = vrot.lane.b32.xlu2 %v668_v45, %s1322_s11 }
 0xa40   : > { %v689_v56 = vpop.permute.xlu1 %688 }
 0xa43   : > { %695 = vperm.xlu2 %1169, %v692_v46  }
 0xa95   : > { %v671_v47 = vpop.permute.xlu2 %670 }
 0xa96   : > { %v673_v48 = vadd.f32 %v1095_v29, %v671_v47 }
 0xa98   : > { %1200 = vtanh.f32 %v673_v48 }
 0xa9d   : > { %v696_v54 = vpop.permute.xlu2 %695 }
 0xa9e   : > { %v1201_v49 = vpop.eup %1200  ;;  %v698_v57 = vmul.f32 %v696_v54, %v616_v23 }
 0xa9f   : > { %677 = vrot.lane.b32.xlu0 %v1201_v49, %s1324_s16 }
 0xb11   : > { %v678_v51 = vpop.permute.xlu0 %677 }
 0xb12   : > { %v680_v53 = vmul.f32 %v678_v51, %v675_v50 }
 0xb14   : > { %v682_v55 = vadd.f32 %v681_v52, %v680_v53 }
 0xb16   : > { %v691_v58 = vmul.f32 %v689_v56, %v682_v55  ;;  %v858_v55 = vsub.f32 1.0, %v1106_v37 }
 0xb18   : > { %v699_v59 = vadd.f32 %v698_v57, %v691_v58 }
 0xb1a   : > { %703 = vrot.lane.b32.xlu0 %v699_v59, %s1324_s16 }
 0xb8c   : > { %v704_v60 = vpop.permute.xlu0 %703 }
 0xb8d   : > { %1100 = vmatmul.msk.f32.vlgmr.msrb.gmra.mxu1 %vm288_vm5, %v704_v60 }
 0xc0a   : > { %v724_v61 = vpop.f32.mrf.mxu1 }
 0xc0b   : > { %v725_v62 = vadd.f32 %v1465_v5, %v724_v61 }
 0xc0d   : > { %748 = vrot.lane.b32.xlu1 %v725_v62, %s1322_s11  ;;  %v727_v1 = vadd.f32 %v1099_v0, %v725_v62 }
 0xc0f   : > { %v1101_v2 = vmul.f32 -1.442695, %v727_v1 }
 0xc11   : > { %1202 = vpow2.f32 %v1101_v2 }
 0xc15   : > { %771 = vperm.xlu1 %1168, %v1102_v63  }
 0xc17   : > { %v1203_v3 = vpop.eup %1202 }
 0xc18   : > { %v731_v6 = vadd.f32 1.0, %v1203_v3 }
 0xc1a   : > { %1204 = vrcp.f32 %v731_v6  ;;  %v743_v12 = vand.u32 2147483648, %v731_v6  ;;  %vm737_vm13 = vweird.f32 %v731_v6  ;;  %v741_v13 = vand.u32 2147483647, %v731_v6 }
 0xc1c   : > { %v744_v15 = vor.u32 1.1754944e-38, %v743_v12  ;;  %vm742_vm15 = vcmp.eq.f32.partialorder %v741_v13, 8.507059e+37 }
 0xc20   : > { %v1205_v7 = vpop.eup %1204 }
 0xc21   : > { %v733_v8 = vmul.f32 %v1205_v7, %v731_v6  ;;  %vm738_vm12 = vweird.f32 %v1205_v7 }
 0xc22   : > { %vm739_vm14 = vmor %vm737_vm13, %vm738_vm12 }
 0xc23   : > { %v734_v9 = vsub.f32 1.0, %v733_v8 }
 0xc25   : > { %v735_v10 = vmul.f32 %v1205_v7, %v734_v9 }
 0xc27   : > { %v736_v11 = vadd.f32 %v1205_v7, %v735_v10  ;;  %v1110_v10 = vsel %vm932_vm6, 1.0, %v1321_v4 }
 0xc29   : > { %v740_v14 = vsel %vm739_vm14, %v1205_v7, %v736_v11  ;;  %v1107_v11 = vld [vmem:[%s1443_s26 + $0x38] sm:$0xff]  ;;  %s1270_s26 = scalar_lea.hbm %s1595_s5, 16 }
 0xc2a   : > { %v745_v17 = vsel %vm742_vm15, %v744_v15, %v740_v14  ;;  %p1272_p5 = scmp.lt.s32.totalorder %s1270_s26, %s1266_s15 }
 0xc2b   : > { %v758_v23 = vsub.f32 1.0, %v745_v17  ;;  %v764_v25 = vmul.f32 %v745_v17, %v699_v59 }
 0xc2c   : > { %p1273_p7 = por %p1272_p5, %p1271_p4 }
 0xc2e   : > { %p1274_p8 = pnand %p1273_p7, %p1269_p3 }
 0xc7f   : > { %v749_v16 = vpop.permute.xlu1 %748 }
 0xc80   : > { %v751_v18 = vmul.f32 %v749_v16, %v745_v17 }
 0xc82   : > { %753 = vrot.lane.b32.xlu2 %v751_v18, %s1322_s11 }
 0xc87   : > { %v772_v30 = vpop.permute.xlu1 %771 }
 0xc8a   : > { %778 = vperm.xlu2 %1169, %v775_v19  }
 0xcdc   : > { %v754_v20 = vpop.permute.xlu2 %753 }
 0xcdd   : > { %v756_v21 = vadd.f32 %v1099_v0, %v754_v20 }
 0xcdf   : > { %1206 = vtanh.f32 %v756_v21 }
 0xce4   : > { %v779_v28 = vpop.permute.xlu2 %778 }
 0xce5   : > { %v1207_v22 = vpop.eup %1206  ;;  %v781_v31 = vmul.f32 %v779_v28, %v699_v59 }
 0xce6   : > { %760 = vrot.lane.b32.xlu0 %v1207_v22, %s1324_s16 }
 0xd58   : > { %v761_v24 = vpop.permute.xlu0 %760 }
 0xd59   : > { %v763_v27 = vmul.f32 %v761_v24, %v758_v23 }
 0xd5b   : > { %v765_v29 = vadd.f32 %v764_v25, %v763_v27  ;;  %v941_v25 = vsub.f32 1.0, %v1110_v10 }
 0xd5d   : > { %v774_v32 = vmul.f32 %v772_v30, %v765_v29  ;;  %v949_v30 = vld [vmem:[%s277_s8] sm:$0xff] }
 0xd5f   : > { %v782_v33 = vadd.f32 %v781_v31, %v774_v32 }
 0xd61   : > { %786 = vrot.lane.b32.xlu0 %v782_v33, %s1324_s16 }
 0xdd3   : > { %v787_v34 = vpop.permute.xlu0 %786 }
 0xdd4   : > { %1104 = vmatmul.msk.f32.vlgmr.msrb.gmra.mxu2 %vm288_vm5, %v787_v34 }
 0xe57   : > { %v807_v35 = vpop.f32.mrf.mxu2 }
 0xe58   : > { %v808_v36 = vadd.f32 %v1465_v5, %v807_v35 }
 0xe5a   : > { %831 = vrot.lane.b32.xlu1 %v808_v36, %s1322_s11  ;;  %v810_v39 = vadd.f32 %v1103_v38, %v808_v36 }
 0xe5c   : > { %v1105_v40 = vmul.f32 -1.442695, %v810_v39 }
 0xe5e   : > { %1208 = vpow2.f32 %v1105_v40 }
 0xe62   : > { %854 = vperm.xlu1 %1168, %v1106_v37  }
 0xe64   : > { %v1209_v41 = vpop.eup %1208 }
 0xe65   : > { %v814_v42 = vadd.f32 1.0, %v1209_v41 }
 0xe67   : > { %1210 = vrcp.f32 %v814_v42  ;;  %v826_v48 = vand.u32 2147483648, %v814_v42  ;;  %vm820_vm2 = vweird.f32 %v814_v42  ;;  %v824_v49 = vand.u32 2147483647, %v814_v42 }
 0xe69   : > { %v827_v51 = vor.u32 1.1754944e-38, %v826_v48  ;;  %vm825_vm4 = vcmp.eq.f32.partialorder %v824_v49, 8.507059e+37 }
 0xe6d   : > { %v1211_v43 = vpop.eup %1210 }
 0xe6e   : > { %v816_v44 = vmul.f32 %v1211_v43, %v814_v42  ;;  %vm821_vm1 = vweird.f32 %v1211_v43 }
 0xe6f   : > { %vm822_vm3 = vmor %vm820_vm2, %vm821_vm1 }
 0xe70   : > { %v817_v45 = vsub.f32 1.0, %v816_v44 }
 0xe72   : > { %v818_v46 = vmul.f32 %v1211_v43, %v817_v45 }
 0xe74   : > { %v819_v47 = vadd.f32 %v1211_v43, %v818_v46 }
 0xe76   : > { %v823_v50 = vsel %vm822_vm3, %v1211_v43, %v819_v47 }
 0xe77   : > { %v828_v53 = vsel %vm825_vm4, %v827_v51, %v823_v50 }
 0xe78   : > { %v841_v59 = vsub.f32 1.0, %v828_v53  ;;  %v847_v61 = vmul.f32 %v828_v53, %v782_v33 }
 0xecc   : > { %v832_v52 = vpop.permute.xlu1 %831 }
 0xecd   : > { %v834_v54 = vmul.f32 %v832_v52, %v828_v53 }
 0xecf   : > { %836 = vrot.lane.b32.xlu2 %v834_v54, %s1322_s11 }
 0xed4   : > { %v855_v1 = vpop.permute.xlu1 %854 }
 0xed7   : > { %861 = vperm.xlu2 %1169, %v858_v55  }
 0xf29   : > { %v837_v56 = vpop.permute.xlu2 %836 }
 0xf2a   : > { %v839_v57 = vadd.f32 %v1103_v38, %v837_v56 }
 0xf2c   : > { %1212 = vtanh.f32 %v839_v57 }
 0xf31   : > { %v862_v63 = vpop.permute.xlu2 %861 }
 0xf32   : > { %v1213_v58 = vpop.eup %1212  ;;  %v864_v2 = vmul.f32 %v862_v63, %v782_v33 }
 0xf33   : > { %843 = vrot.lane.b32.xlu0 %v1213_v58, %s1324_s16 }
 0xfa5   : > { %v844_v60 = vpop.permute.xlu0 %843 }
 0xfa6   : > { %v846_v62 = vmul.f32 %v844_v60, %v841_v59 }
 0xfa8   : > { %v848_v0 = vadd.f32 %v847_v61, %v846_v62 }
 0xfaa   : > { %v857_v3 = vmul.f32 %v855_v1, %v848_v0 }
 0xfac   : > { %v865_v6 = vadd.f32 %v864_v2, %v857_v3 }
 0xfae   : > { %869 = vrot.lane.b32.xlu0 %v865_v6, %s1324_s16 }
0x1020   : > { %v870_v7 = vpop.permute.xlu0 %869 }
0x1021   : > { %1108 = vmatmul.msk.f32.vlgmr.msrb.gmra.mxu3 %vm288_vm5, %v870_v7 }
0x10a4   : > { %v890_v8 = vpop.f32.mrf.mxu3 }
0x10a5   : > { %v891_v9 = vadd.f32 %v1465_v5, %v890_v8 }
0x10a7   : > { %914 = vrot.lane.b32.xlu1 %v891_v9, %s1322_s11  ;;  %v893_v12 = vadd.f32 %v1107_v11, %v891_v9 }
0x10a9   : > { %v1109_v13 = vmul.f32 -1.442695, %v893_v12 }
0x10ab   : > { %1214 = vpow2.f32 %v1109_v13 }
0x10af   : > { %937 = vperm.xlu1 %1168, %v1110_v10  }
0x10b1   : > { %v1215_v14 = vpop.eup %1214 }
0x10b2   : > { %v897_v15 = vadd.f32 1.0, %v1215_v14 }
0x10b4   : > { %1216 = vrcp.f32 %v897_v15  ;;  %v909_v5 = vand.u32 2147483648, %v897_v15  ;;  %vm903_vm8 = vweird.f32 %v897_v15  ;;  %v907_v21 = vand.u32 2147483647, %v897_v15 }
0x10b6   : > { %v910_v26 = vor.u32 1.1754944e-38, %v909_v5  ;;  %vm908_vm10 = vcmp.eq.f32.partialorder %v907_v21, 8.507059e+37 }
0x10ba   : > { %v1217_v16 = vpop.eup %1216 }
0x10bb   : > { %v899_v17 = vmul.f32 %v1217_v16, %v897_v15  ;;  %vm904_vm7 = vweird.f32 %v1217_v16 }
0x10bc   : > { %vm905_vm9 = vmor %vm903_vm8, %vm904_vm7 }
0x10bd   : > { %v900_v18 = vsub.f32 1.0, %v899_v17 }
0x10bf   : > { %v901_v19 = vmul.f32 %v1217_v16, %v900_v18 }
0x10c1   : > { %v902_v20 = vadd.f32 %v1217_v16, %v901_v19 }
0x10c3   : > { %v906_v4 = vsel %vm905_vm9, %v1217_v16, %v902_v20 }
0x10c4   : > { %v911_v23 = vsel %vm908_vm10, %v910_v26, %v906_v4 }
0x10c5   : > { %v924_v31 = vsub.f32 1.0, %v911_v23  ;;  %v930_v33 = vmul.f32 %v911_v23, %v865_v6 }
0x1119   : > { %v915_v22 = vpop.permute.xlu1 %914 }
0x111a   : > { %v917_v24 = vmul.f32 %v915_v22, %v911_v23 }
0x111c   : > { %919 = vrot.lane.b32.xlu2 %v917_v24, %s1322_s11  ;;  %s269_s11 = scalar_lea.vmem [#allocation5], %s1078_s9 }
0x111d   : > { %s974_s12 = sshll.u32 %s269_s11, 4  ;;  %s975_s12 = int_to_ptr.vmem [resolvable:$true] %s974_s12 }
0x1121   : > { %v938_v37 = vpop.permute.xlu1 %937 }
0x1124   : > { %944 = vperm.xlu2 %1169, %v941_v25  }
0x1176   : > { %v920_v27 = vpop.permute.xlu2 %919 }
0x1177   : > { %v922_v28 = vadd.f32 %v1107_v11, %v920_v27 }
0x1179   : > { %1218 = vtanh.f32 %v922_v28 }
0x117e   : > { %v945_v35 = vpop.permute.xlu2 %944 }
0x117f   : > { %v1219_v29 = vpop.eup %1218  ;;  %v947_v38 = vmul.f32 %v945_v35, %v865_v6 }
0x1180   : > { %926 = vrot.lane.b32.xlu0 %v1219_v29, %s1324_s16 }
0x1188   : > { %952 = vperm.xlu0 %1170, %v949_v30  }
0x11f2   : > { %v927_v32 = vpop.permute.xlu0 %926 }
0x11f3   : > { %v929_v34 = vmul.f32 %v927_v32, %v924_v31 }
0x11f5   : > { %v931_v36 = vadd.f32 %v930_v33, %v929_v34 }
0x11f7   : > { %v940_v39 = vmul.f32 %v938_v37, %v931_v36 }
0x11f9   : > { %v948_v40 = vadd.f32 %v947_v38, %v940_v39 }
0x11fa   : > { %v953_v41 = vpop.permute.xlu0 %952 }
0x11fb   : > { %v955_v42 = vmul.f32 %v953_v41, %v948_v40 }
0x11fd   : > { %957 = vrot.lane.b32.xlu1 %v955_v42, %s1324_s16 }
0x126f   : > { %v958_v43 = vpop.permute.xlu1 %957 }
0x1270   : > { %960 = vst.msk [vmem:[%s269_s11] sm:$0xff] %vm288_vm5, %v958_v43 }
0x1271   : > { %1277 = shalt.err (!%p1274_p8)
}
0x1272   : > { %1117 = dma.vmem_to_hbm [thread:$0]  (%p1405_p11), %s975_s12, 128, %s977_s23, %s962_s25  }
0x1273 PF: > { %s988_s14 = sand.u32 1, %s1304_s18   ;;  %p1124_p10 = pnand %p1073_p9, %p1409_p12 }
0x1274   : > { %s989_s9 = scalar_lea.sflag [#allocation4], %s988_s14 }
0x1275   : > { %p1125_p1 = pneg %p1124_p10 }
0x1277   : > { %1299 = dma.done.wait (%p1125_p1), %s989_s9, 128  }
0x1278   : > { %1301 = vsyncadd (%p1125_p1), %s989_s9, 4294967168  ;;  %p18_p2 = scmp.ge.s32.totalorder %s1380_s24, 4   ;;  %s1601_s18 = smov %s1308_s19 }
0x1279   : > { %s1602_s19 = smov %s1312_s20  ;;  %s1603_s20 = smov %s1392_s27 }
0x127a   : > { %s1604_s21 = smov %s1380_s24  ;;  %20 = sbr.rel (!%p18_p2) target bundleno = 5 (0x5), region = 98 }
0x127f   :  { %995 = vsyncpa [#allocation3], 1 }
0x1280   :  { %997 = vsyncpa [#allocation3 + $0x1], 1 }
0x1281   :  { %998 = vsyncpa [#allocation4], 1 }
0x1282   :  { %1000 = vsyncpa [#allocation4 + $0x1], 1 }

</bundles_post_ra>
